<compile_context>
chip_gen: v7x
topology: tpu7x:2x2x1
jax: 0.10.0
libtpu: 0.0.40
codegen_flags: <defaults>
</compile_context>

<pallas_src>
import functools

import numpy as np
import jax
import jax.numpy as jnp
from jax.experimental import pallas as pl
from jax.experimental.pallas import tpu as pltpu


def _round_up(x, m):
    return (x + m - 1) // m * m


# --------------------------- fused forward kernel ----------------------------
def _generator_fused_kernel(a_ref, feat_ref, ids_ref,
                            w0_ref, b0_ref, w1_ref, b1_ref,
                            wm1_ref, bm1_ref, wm2_ref, bm2_ref, wm3_ref,
                            o_ref, *, hp):
    f32 = jnp.float32
    bf16 = jnp.bfloat16

    a = a_ref[...]                     # (Np, Np) bf16, rows pre-scaled by D_in^-1
    x = feat_ref[...]                  # (Np, Fp) bf16

    # ---- GCN layer 0: relu( (D^-1 A) @ (X W0) + b0 ) ----
    xw = jnp.dot(x, w0_ref[...], preferred_element_type=f32)
    h = jnp.dot(a, xw.astype(bf16), preferred_element_type=f32)
    h = jnp.maximum(h + b0_ref[...], 0.0)

    # ---- GCN layer 1: (D^-1 A) @ (h W1) + b1 (no activation) ----
    hw = jnp.dot(h.astype(bf16), w1_ref[...], preferred_element_type=f32)
    h = jnp.dot(a, hw.astype(bf16), preferred_element_type=f32) + b1_ref[...]

    # ---- masked-row gather: one-hot built in-vreg from int32 ids (no HBM sel) ----
    mp_ = ids_ref.shape[0]
    np_ = a_ref.shape[0]
    col = jax.lax.broadcasted_iota(jnp.int32, (mp_, np_), 1)
    sel = (col == ids_ref[...]).astype(bf16)          # padded ids are -1 -> zero rows
    hm = jnp.maximum(jnp.dot(sel, h.astype(bf16), preferred_element_type=f32), 0.0)
    fm = jnp.dot(sel, x, preferred_element_type=f32)

    # ---- MLP on concat([hm, fm]); Wm1 split with static ref views ----
    z = (jnp.dot(hm.astype(bf16), wm1_ref[:hp, :], preferred_element_type=f32)
         + jnp.dot(fm.astype(bf16), wm1_ref[hp:, :], preferred_element_type=f32)
         + bm1_ref[...])
    z = jnp.maximum(z, 0.0)                            # Dropout = eval no-op
    z = jnp.dot(z.astype(bf16), wm2_ref[...], preferred_element_type=f32) + bm2_ref[...]
    z = jnp.maximum(z, 0.0)
    o_ref[...] = jnp.dot(z.astype(bf16), wm3_ref[...],
                         preferred_element_type=f32).astype(o_ref.dtype)


# ---------------------- one-time parameter preparation -----------------------
def prepare_generator_params(params, input_dim, hidden_dim, output_dim):
    """Pad / cast all static weights once (not per forward call)."""
    bf16, f32 = jnp.bfloat16, jnp.float32
    fp = _round_up(input_dim, 128)
    hp = _round_up(hidden_dim, 128)
    op = _round_up(output_dim, 128)

    def pad2(x, r, c, dtype):
        return jnp.zeros((r, c), dtype).at[:x.shape[0], :x.shape[1]].set(x.astype(dtype))

    # Wm1 rows: [0:H) act on hm, [H:H+F) act on fm -> place at [0:H) and [hp:hp+F)
    wm1 = jnp.zeros((hp + fp, hp), bf16)
    wm1 = wm1.at[:hidden_dim, :hidden_dim].set(params["Wm1"][:hidden_dim].astype(bf16))
    wm1 = wm1.at[hp:hp + input_dim, :hidden_dim].set(params["Wm1"][hidden_dim:].astype(bf16))

    prepared = {
        "W0": pad2(params["W0"], fp, hp, bf16),
        "b0": pad2(params["b0"], 1, hp, f32),
        "W1": pad2(params["W1"], hp, hp, bf16),
        "b1": pad2(params["b1"], 1, hp, f32),
        "Wm1": wm1,
        "bm1": pad2(params["bm1"], 1, hp, f32),
        "Wm2": pad2(params["Wm2"], hp, hp, bf16),
        "bm2": pad2(params["bm2"], 1, hp, f32),
        "Wm3": pad2(params["Wm3"], hp, op, bf16),
    }
    dims = {"input_dim": input_dim, "hidden_dim": hidden_dim,
            "output_dim": output_dim, "fp": fp, "hp": hp, "op": op}
    return prepared, dims


# ------------------------------ wrapper / glue --------------------------------
def generator_forward(adj, feat, masked_offset, prepared, dims):
    n = feat.shape[0]
    m = masked_offset.shape[0]
    bf16, f32 = jnp.bfloat16, jnp.float32
    fp, hp, op = dims["fp"], dims["hp"], dims["op"]
    input_dim, output_dim = dims["input_dim"], dims["output_dim"]

    np_ = _round_up(n, 8)
    mp_ = _round_up(m, 8)

    # per-call graph-dependent prep: normalize once, pad, cast bf16
    a_p = jnp.zeros((np_, np_), f32).at[:n, :n].set(adj)
    inv_deg = 1.0 / jnp.maximum(jnp.sum(a_p, axis=1, keepdims=True), 1.0)
    a_norm = (a_p * inv_deg).astype(bf16)              # D_in^-1 folded into A
    feat_p = jnp.zeros((np_, fp), bf16).at[:n, :input_dim].set(feat.astype(bf16))
    ids = jnp.full((mp_, 1), -1, jnp.int32).at[:m, 0].set(masked_offset.astype(jnp.int32))

    inputs = (a_norm, feat_p, ids,
              prepared["W0"], prepared["b0"], prepared["W1"], prepared["b1"],
              prepared["Wm1"], prepared["bm1"], prepared["Wm2"], prepared["bm2"],
              prepared["Wm3"])

    vmem = pl.BlockSpec(memory_space=pltpu.MemorySpace.VMEM)
    out = pl.pallas_call(
        functools.partial(_generator_fused_kernel, hp=hp),
        in_specs=[vmem] * len(inputs),
        out_specs=vmem,
        out_shape=jax.ShapeDtypeStruct((mp_, op), f32),
        compiler_params=pltpu.CompilerParams(
            vmem_limit_bytes=64 * 1024 * 1024),       # headroom even on v7x (64 MiB)
    )(*inputs)

    return out[:m, :output_dim]


# ------------------------- pure-JAX f32 reference -----------------------------
def generator_reference(adj, feat, masked_offset, params):
    deg = jnp.maximum(jnp.sum(adj, axis=1, keepdims=True), 1.0)
    a_norm = adj / deg
    h = jnp.maximum(a_norm @ (feat @ params["W0"]) + params["b0"], 0.0)
    h = a_norm @ (h @ params["W1"]) + params["b1"]
    hm = jnp.maximum(h[masked_offset], 0.0)
    x = jnp.concatenate([hm, feat[masked_offset]], axis=1)
    z = jnp.maximum(x @ params["Wm1"] + params["bm1"], 0.0)
    z = jnp.maximum(z @ params["Wm2"] + params["bm2"], 0.0)
    return z @ params["Wm3"]


# ----------------------------- parameter setup --------------------------------
def xavier_uniform(key, fan_in, fan_out):
    bound = (6.0 / (fan_in + fan_out)) ** 0.5
    return jax.random.uniform(key, (fan_in, fan_out), jnp.float32, -bound, bound)


def init_generator_params(key, input_dim, hidden_dim, output_dim):
    ks = jax.random.split(key, 5)
    return {
        # GCN (dgl GraphConv: glorot weight, zero bias)
        "W0": xavier_uniform(ks[0], input_dim, hidden_dim),
        "b0": jnp.zeros((1, hidden_dim), jnp.float32),
        "W1": xavier_uniform(ks[1], hidden_dim, hidden_dim),
        "b1": jnp.zeros((1, hidden_dim), jnp.float32),
        # generator_MLP (xavier_uniform weights, zero biases, last Linear no bias)
        "Wm1": xavier_uniform(ks[2], hidden_dim + input_dim, hidden_dim),
        "bm1": jnp.zeros((1, hidden_dim), jnp.float32),
        "Wm2": xavier_uniform(ks[3], hidden_dim, hidden_dim),
        "bm2": jnp.zeros((1, hidden_dim), jnp.float32),
        "Wm3": xavier_uniform(ks[4], hidden_dim, output_dim),
    }


if __name__ == "__main__":
    N = 16            # number of graph nodes
    INPUT_DIM = 32    # node feature dim
    HIDDEN_DIM = 32
    OUTPUT_DIM = 16
    M = 8             # number of masked nodes

    key = jax.random.PRNGKey(0)
    k_feat, k_adj, k_params = jax.random.split(key, 3)

    feat = jax.random.normal(k_feat, (N, INPUT_DIM), jnp.float32)
    # random directed graph; A[dst, src] = 1.0 for edge src -> dst
    adj = (jax.random.uniform(k_adj, (N, N)) < 0.3).astype(jnp.float32)
    masked_offset = jnp.array([0, 2, 4, 5, 7, 9, 11, 13], dtype=jnp.int32)

    params = init_generator_params(k_params, INPUT_DIM, HIDDEN_DIM, OUTPUT_DIM)
    prepared, dims = prepare_generator_params(params, INPUT_DIM, HIDDEN_DIM, OUTPUT_DIM)

    out = generator_forward(adj, feat, masked_offset, prepared, dims)
    out = jax.block_until_ready(out)
    assert out.shape == (M, OUTPUT_DIM), out.shape

    # correctness vs. pure-f32 reference (loose tolerance: bf16 operands/intermediates)
    ref = jax.block_until_ready(generator_reference(adj, feat, masked_offset, params))
    scale = float(jnp.max(jnp.abs(ref))) + 1e-6
    np.testing.assert_allclose(np.asarray(out), np.asarray(ref),
                               rtol=5e-2, atol=5e-2 * scale)

    print("KERNEL_OK")
</pallas_src>

<mosaic_0001>
module attributes {stable_mosaic.version = 11 : i64} {
  func.func @_generator_fused_kernel(%arg0: memref<16x16xbf16, #tpu.memory_space<vmem>>, %arg1: memref<16x128xbf16, #tpu.memory_space<vmem>>, %arg2: memref<8x1xi32, #tpu.memory_space<vmem>>, %arg3: memref<128x128xbf16, #tpu.memory_space<vmem>>, %arg4: memref<1x128xf32, #tpu.memory_space<vmem>>, %arg5: memref<128x128xbf16, #tpu.memory_space<vmem>>, %arg6: memref<1x128xf32, #tpu.memory_space<vmem>>, %arg7: memref<256x128xbf16, #tpu.memory_space<vmem>>, %arg8: memref<1x128xf32, #tpu.memory_space<vmem>>, %arg9: memref<128x128xbf16, #tpu.memory_space<vmem>>, %arg10: memref<1x128xf32, #tpu.memory_space<vmem>>, %arg11: memref<128x128xbf16, #tpu.memory_space<vmem>>, %arg12: memref<8x128xf32, #tpu.memory_space<vmem>>) attributes {dimension_semantics = [], scalar_prefetch = 0 : i64, scratch_operands = 0 : i64, tpu.core_type = #tpu.core_type<tc>} {
    %c0 = arith.constant 0 : index
    %c0_0 = arith.constant 0 : index
    %0 = vector.load %arg0[%c0, %c0_0] : memref<16x16xbf16, #tpu.memory_space<vmem>>, vector<16x16xbf16>
    %c0_1 = arith.constant 0 : index
    %c0_2 = arith.constant 0 : index
    %1 = vector.load %arg1[%c0_1, %c0_2] : memref<16x128xbf16, #tpu.memory_space<vmem>>, vector<16x128xbf16>
    %c0_3 = arith.constant 0 : index
    %c0_4 = arith.constant 0 : index
    %2 = vector.load %arg3[%c0_3, %c0_4] : memref<128x128xbf16, #tpu.memory_space<vmem>>, vector<128x128xbf16>
    %cst = arith.constant dense<0.000000e+00> : vector<16x128xf32>
    %3 = tpu.matmul %1, %2, %cst {dimension_numbers = #tpu.dot_dimension_numbers<[1], [0], [0], [1], [0, 0, 1, 1], [], []>} : vector<16x128xbf16>, vector<128x128xbf16>, vector<16x128xf32> -> vector<16x128xf32>
    %4 = arith.truncf %3 : vector<16x128xf32> to vector<16x128xbf16>
    %cst_5 = arith.constant dense<0.000000e+00> : vector<16x128xf32>
    %5 = tpu.matmul %0, %4, %cst_5 {dimension_numbers = #tpu.dot_dimension_numbers<[1], [0], [0], [1], [0, 0, 1, 1], [], []>} : vector<16x16xbf16>, vector<16x128xbf16>, vector<16x128xf32> -> vector<16x128xf32>
    %c0_6 = arith.constant 0 : index
    %c0_7 = arith.constant 0 : index
    %6 = vector.load %arg4[%c0_6, %c0_7] : memref<1x128xf32, #tpu.memory_space<vmem>>, vector<1x128xf32>
    %7 = vector.broadcast %6 : vector<1x128xf32> to vector<16x128xf32>
    %8 = arith.addf %5, %7 : vector<16x128xf32>
    %cst_8 = arith.constant 0.000000e+00 : f32
    %9 = vector.broadcast %cst_8 : f32 to vector<16x128xf32>
    %10 = arith.maximumf %8, %9 : vector<16x128xf32>
    %11 = arith.truncf %10 : vector<16x128xf32> to vector<16x128xbf16>
    %c0_9 = arith.constant 0 : index
    %c0_10 = arith.constant 0 : index
    %12 = vector.load %arg5[%c0_9, %c0_10] : memref<128x128xbf16, #tpu.memory_space<vmem>>, vector<128x128xbf16>
    %cst_11 = arith.constant dense<0.000000e+00> : vector<16x128xf32>
    %13 = tpu.matmul %11, %12, %cst_11 {dimension_numbers = #tpu.dot_dimension_numbers<[1], [0], [0], [1], [0, 0, 1, 1], [], []>} : vector<16x128xbf16>, vector<128x128xbf16>, vector<16x128xf32> -> vector<16x128xf32>
    %14 = arith.truncf %13 : vector<16x128xf32> to vector<16x128xbf16>
    %cst_12 = arith.constant dense<0.000000e+00> : vector<16x128xf32>
    %15 = tpu.matmul %0, %14, %cst_12 {dimension_numbers = #tpu.dot_dimension_numbers<[1], [0], [0], [1], [0, 0, 1, 1], [], []>} : vector<16x16xbf16>, vector<16x128xbf16>, vector<16x128xf32> -> vector<16x128xf32>
    %c0_13 = arith.constant 0 : index
    %c0_14 = arith.constant 0 : index
    %16 = vector.load %arg6[%c0_13, %c0_14] : memref<1x128xf32, #tpu.memory_space<vmem>>, vector<1x128xf32>
    %17 = vector.broadcast %16 : vector<1x128xf32> to vector<16x128xf32>
    %18 = arith.addf %15, %17 : vector<16x128xf32>
    %19 = tpu.iota {dimensions = array<i32: 1>} : vector<8x16xi32>
    %c0_15 = arith.constant 0 : index
    %c0_16 = arith.constant 0 : index
    %20 = vector.load %arg2[%c0_15, %c0_16] : memref<8x1xi32, #tpu.memory_space<vmem>>, vector<8x1xi32>
    %21 = vector.broadcast %20 : vector<8x1xi32> to vector<8x16xi32>
    %22 = arith.cmpi eq, %19, %21 : vector<8x16xi32>
    %23 = arith.extui %22 : vector<8x16xi1> to vector<8x16xi32>
    %24 = arith.sitofp %23 : vector<8x16xi32> to vector<8x16xf32>
    %25 = arith.truncf %24 : vector<8x16xf32> to vector<8x16xbf16>
    %26 = arith.truncf %18 : vector<16x128xf32> to vector<16x128xbf16>
    %cst_17 = arith.constant dense<0.000000e+00> : vector<8x128xf32>
    %27 = tpu.matmul %25, %26, %cst_17 {dimension_numbers = #tpu.dot_dimension_numbers<[1], [0], [0], [1], [0, 0, 1, 1], [], []>} : vector<8x16xbf16>, vector<16x128xbf16>, vector<8x128xf32> -> vector<8x128xf32>
    %cst_18 = arith.constant 0.000000e+00 : f32
    %28 = vector.broadcast %cst_18 : f32 to vector<8x128xf32>
    %29 = arith.maximumf %27, %28 : vector<8x128xf32>
    %cst_19 = arith.constant dense<0.000000e+00> : vector<8x128xf32>
    %30 = tpu.matmul %25, %1, %cst_19 {dimension_numbers = #tpu.dot_dimension_numbers<[1], [0], [0], [1], [0, 0, 1, 1], [], []>} : vector<8x16xbf16>, vector<16x128xbf16>, vector<8x128xf32> -> vector<8x128xf32>
    %31 = arith.truncf %29 : vector<8x128xf32> to vector<8x128xbf16>
    %c0_20 = arith.constant 0 : index
    %c0_21 = arith.constant 0 : index
    %32 = vector.load %arg7[%c0_20, %c0_21] : memref<256x128xbf16, #tpu.memory_space<vmem>>, vector<128x128xbf16>
    %cst_22 = arith.constant dense<0.000000e+00> : vector<8x128xf32>
    %33 = tpu.matmul %31, %32, %cst_22 {dimension_numbers = #tpu.dot_dimension_numbers<[1], [0], [0], [1], [0, 0, 1, 1], [], []>} : vector<8x128xbf16>, vector<128x128xbf16>, vector<8x128xf32> -> vector<8x128xf32>
    %34 = arith.truncf %30 : vector<8x128xf32> to vector<8x128xbf16>
    %c128 = arith.constant 128 : index
    %c0_23 = arith.constant 0 : index
    %35 = vector.load %arg7[%c128, %c0_23] : memref<256x128xbf16, #tpu.memory_space<vmem>>, vector<128x128xbf16>
    %cst_24 = arith.constant dense<0.000000e+00> : vector<8x128xf32>
    %36 = tpu.matmul %34, %35, %cst_24 {dimension_numbers = #tpu.dot_dimension_numbers<[1], [0], [0], [1], [0, 0, 1, 1], [], []>} : vector<8x128xbf16>, vector<128x128xbf16>, vector<8x128xf32> -> vector<8x128xf32>
    %37 = arith.addf %33, %36 : vector<8x128xf32>
    %c0_25 = arith.constant 0 : index
    %c0_26 = arith.constant 0 : index
    %38 = vector.load %arg8[%c0_25, %c0_26] : memref<1x128xf32, #tpu.memory_space<vmem>>, vector<1x128xf32>
    %39 = vector.broadcast %38 : vector<1x128xf32> to vector<8x128xf32>
    %40 = arith.addf %37, %39 : vector<8x128xf32>
    %cst_27 = arith.constant 0.000000e+00 : f32
    %41 = vector.broadcast %cst_27 : f32 to vector<8x128xf32>
    %42 = arith.maximumf %40, %41 : vector<8x128xf32>
    %43 = arith.truncf %42 : vector<8x128xf32> to vector<8x128xbf16>
    %c0_28 = arith.constant 0 : index
    %c0_29 = arith.constant 0 : index
    %44 = vector.load %arg9[%c0_28, %c0_29] : memref<128x128xbf16, #tpu.memory_space<vmem>>, vector<128x128xbf16>
    %cst_30 = arith.constant dense<0.000000e+00> : vector<8x128xf32>
    %45 = tpu.matmul %43, %44, %cst_30 {dimension_numbers = #tpu.dot_dimension_numbers<[1], [0], [0], [1], [0, 0, 1, 1], [], []>} : vector<8x128xbf16>, vector<128x128xbf16>, vector<8x128xf32> -> vector<8x128xf32>
    %c0_31 = arith.constant 0 : index
    %c0_32 = arith.constant 0 : index
    %46 = vector.load %arg10[%c0_31, %c0_32] : memref<1x128xf32, #tpu.memory_space<vmem>>, vector<1x128xf32>
    %47 = vector.broadcast %46 : vector<1x128xf32> to vector<8x128xf32>
    %48 = arith.addf %45, %47 : vector<8x128xf32>
    %cst_33 = arith.constant 0.000000e+00 : f32
    %49 = vector.broadcast %cst_33 : f32 to vector<8x128xf32>
    %50 = arith.maximumf %48, %49 : vector<8x128xf32>
    %51 = arith.truncf %50 : vector<8x128xf32> to vector<8x128xbf16>
    %c0_34 = arith.constant 0 : index
    %c0_35 = arith.constant 0 : index
    %52 = vector.load %arg11[%c0_34, %c0_35] : memref<128x128xbf16, #tpu.memory_space<vmem>>, vector<128x128xbf16>
    %cst_36 = arith.constant dense<0.000000e+00> : vector<8x128xf32>
    %53 = tpu.matmul %51, %52, %cst_36 {dimension_numbers = #tpu.dot_dimension_numbers<[1], [0], [0], [1], [0, 0, 1, 1], [], []>} : vector<8x128xbf16>, vector<128x128xbf16>, vector<8x128xf32> -> vector<8x128xf32>
    %c0_37 = arith.constant 0 : index
    %c0_38 = arith.constant 0 : index
    %54 = vector.load %arg12[%c0_37, %c0_38] : memref<8x128xf32, #tpu.memory_space<vmem>>, vector<8x128xf32>
    tpu.vector_store %arg12[%c0_37, %c0_38], %53 {strides = array<i32>} : memref<8x128xf32, #tpu.memory_space<vmem>>, vector<8x128xf32>,
    return
  }
}

</mosaic_0001>

<bundles_post_ra>
// kernel: tpu_custom_call.1
= control target key start
LH: loop header
LB: loop body
LE: loop exit
PB: predicated region body
PF: predicated region fallthrough
CT: control target
= control target key end

     0   :  { %17 = vsyncpa [#allocation3], 0  ;;  %s2085_s0 = inlined_call_operand.hbm [shape: bf16[16,16], index: 0, kind: input, shape index: {}]   ;;  %s2086_s1 = inlined_call_operand.hbm [shape: bf16[16,128], index: 1, kind: input, shape index: {}]   ;;  %s2087_s2 = inlined_call_operand.hbm [shape: s32[8,1], index: 2, kind: input, shape index: {}]   ;;  %s2088_s3 = inlined_call_operand.hbm [shape: bf16[128,128], index: 3, kind: input, shape index: {}]   ;;  %s2089_s4 = inlined_call_operand.hbm [shape: f32[1,128], index: 4, kind: input, shape index: {}]   ;;  %s2090_s5 = inlined_call_operand.hbm [shape: bf16[128,128], index: 5, kind: input, shape index: {}]   ;;  %s2091_s6 = inlined_call_operand.hbm [shape: f32[1,128], index: 6, kind: input, shape index: {}]   ;;  %s2092_s7 = inlined_call_operand.hbm [shape: bf16[256,128], index: 7, kind: input, shape index: {}]   ;;  %s2093_s8 = inlined_call_operand.hbm [shape: f32[1,128], index: 8, kind: input, shape index: {}]   ;;  %s2094_s9 = inlined_call_operand.hbm [shape: bf16[128,128], index: 9, kind: input, shape index: {}]   ;;  %s2095_s10 = inlined_call_operand.hbm [shape: f32[1,128], index: 10, kind: input, shape index: {}]   ;;  %s2096_s11 = inlined_call_operand.hbm [shape: bf16[128,128], index: 11, kind: input, shape index: {}]   ;;  %s2097_s12 = inlined_call_operand.hbm [shape: f32[8,128], index: 12, kind: output, shape index: {}]  }
   0x1   :  { %18 = vsyncpa [#allocation6], 0 }
   0x2   :  { %19 = vsyncpa [#allocation9], 0 }
   0x3   :  { %20 = vsyncpa [#allocation12], 0 }
   0x4   :  { %21 = vsyncpa [#allocation15], 0 }
   0x5   :  { %22 = vsyncpa [#allocation18], 0 }
   0x6   :  { %23 = vsyncpa [#allocation21], 0 }
   0x7   :  { %24 = vsyncpa [#allocation4], 0  ;;  %s1716_s21 = smov [#allocation5]   ;;  %s1717_s23 = smov [#allocation8]  }
   0x8   :  { %s42_s22 = sshll.u32 %s1716_s21, 4  ;;  %s64_s24 = sshll.u32 %s1717_s23, 4  ;;  %s43_s22 = int_to_ptr.vmem [resolvable:$true] %s42_s22  ;;  %s1799_s24 = int_to_ptr.vmem [resolvable:$true] %s64_s24 }
   0x9   :  { %s1414_s27 = scalar_lea.hbm %s2086_s1, 128 }
   0xa   :  { %p1415_p0 = scmp.ne.s32.totalorder %s2086_s1, %s1414_s27  ;;  %p1418_p1 = scmp.lt.u32.totalorder %s1414_s27, %s2086_s1 }
   0xc   :  { %p1420_p2 = pnand %p1418_p1, %p1415_p0 }
   0xe   :  { %1423 = shalt.err (!%p1420_p2)
}
   0xf   :  { %s1424_s14 = scalar_lea.vmem %s43_s22, 128  ;;  %p1429_p4 = scmp.lt.s32.totalorder %s43_s22, %s43_s22 }
  0x10   :  { %p1425_p3 = scmp.ne.s32.totalorder %s43_s22, %s1424_s14  ;;  %p1430_p5 = scmp.lt.s32.totalorder %s1424_s14, %s1424_s14 }
  0x12   :  { %p1431_p6 = por %p1430_p5, %p1429_p4 }
  0x14   :  { %p1432_p7 = pnand %p1431_p6, %p1425_p3 }
  0x16   :  { %1435 = shalt.err (!%p1432_p7)
}
  0x17   :  { %s1718_s15 = smov 64   ;;  %s1719_s16 = smov 4  }
  0x18   :  { %48 = dma.hbm_to_vmem [thread:$0]  %s2086_s1, 128, %s43_s22, [#allocation6], %s1718_s15, %s1718_s15, %s1719_s16  }
  0x19   :  { %s1436_s21 = scalar_lea.hbm %s2088_s3, 1024 }
  0x1a   :  { %p1437_p8 = scmp.ne.s32.totalorder %s2088_s3, %s1436_s21  ;;  %p1440_p9 = scmp.lt.u32.totalorder %s1436_s21, %s2088_s3 }
  0x1c   :  { %p1442_p10 = pnand %p1440_p9, %p1437_p8 }
  0x1e   :  { %1445 = shalt.err (!%p1442_p10)
}
  0x1f   :  { %s1446_s28 = scalar_lea.vmem %s1799_s24, 1024  ;;  %p1451_p12 = scmp.lt.s32.totalorder %s1799_s24, %s1799_s24 }
  0x20   :  { %p1447_p11 = scmp.ne.s32.totalorder %s1799_s24, %s1446_s28  ;;  %p1452_p13 = scmp.lt.s32.totalorder %s1446_s28, %s1446_s28 }
  0x22   :  { %p1453_p0 = por %p1452_p13, %p1451_p12 }
  0x24   :  { %p1454_p1 = pnand %p1453_p0, %p1447_p11 }
  0x26   :  { %1457 = shalt.err (!%p1454_p1)
}
  0x27   :  { %70 = dma.hbm_to_vmem [thread:$0]  %s2088_s3, 1024, %s1799_s24, [#allocation9], %s1718_s15, %s1718_s15, %s1719_s16  }
  0x28   :  { %s1720_s29 = smov [#allocation11]   ;;  %s1721_s13 = smov [#allocation14]  }
  0x29   :  { %s86_s30 = sshll.u32 %s1720_s29, 4  ;;  %s108_s14 = sshll.u32 %s1721_s13, 4  ;;  %s87_s30 = int_to_ptr.vmem [resolvable:$true] %s86_s30  ;;  %s1836_s14 = int_to_ptr.vmem [resolvable:$true] %s108_s14 }
  0x2a   :  { %s1458_s19 = scalar_lea.hbm %s2090_s5, 1024 }
  0x2b   :  { %p1459_p2 = scmp.ne.s32.totalorder %s2090_s5, %s1458_s19  ;;  %p1462_p3 = scmp.lt.u32.totalorder %s1458_s19, %s2090_s5 }
  0x2d   :  { %p1464_p4 = pnand %p1462_p3, %p1459_p2 }
  0x2f   :  { %1467 = shalt.err (!%p1464_p4)
}
  0x30   :  { %s1468_s3 = scalar_lea.vmem %s87_s30, 1024  ;;  %p1473_p6 = scmp.lt.s32.totalorder %s87_s30, %s87_s30 }
  0x31   :  { %p1469_p5 = scmp.ne.s32.totalorder %s87_s30, %s1468_s3  ;;  %p1474_p7 = scmp.lt.s32.totalorder %s1468_s3, %s1468_s3 }
  0x33   :  { %p1475_p8 = por %p1474_p7, %p1473_p6 }
  0x35   :  { %p1476_p9 = pnand %p1475_p8, %p1469_p5 }
  0x37   :  { %1479 = shalt.err (!%p1476_p9)
}
  0x38   :  { %92 = dma.hbm_to_vmem [thread:$0]  %s2090_s5, 1024, %s87_s30, [#allocation12], %s1718_s15, %s1718_s15, %s1719_s16  }
  0x39   :  { %s1480_s1 = scalar_lea.hbm %s2092_s7, 2048 }
  0x3a   :  { %p1481_p10 = scmp.ne.s32.totalorder %s2092_s7, %s1480_s1  ;;  %p1484_p11 = scmp.lt.u32.totalorder %s1480_s1, %s2092_s7 }
  0x3c   :  { %p1486_p12 = pnand %p1484_p11, %p1481_p10 }
  0x3e   :  { %1489 = shalt.err (!%p1486_p12)
}
  0x3f   :  { %s1490_s18 = scalar_lea.vmem %s1836_s14, 2048  ;;  %p1495_p0 = scmp.lt.s32.totalorder %s1836_s14, %s1836_s14 }
  0x40   :  { %p1491_p13 = scmp.ne.s32.totalorder %s1836_s14, %s1490_s18  ;;  %p1496_p1 = scmp.lt.s32.totalorder %s1490_s18, %s1490_s18 }
  0x42   :  { %p1497_p2 = por %p1496_p1, %p1495_p0 }
  0x44   :  { %p1498_p3 = pnand %p1497_p2, %p1491_p13 }
  0x46   :  { %1501 = shalt.err (!%p1498_p3)
}
  0x47   :  { %114 = dma.hbm_to_vmem [thread:$0]  %s2092_s7, 2048, %s1836_s14, [#allocation15], %s1718_s15, %s1718_s15, %s1719_s16  }
  0x48   :  { %s1722_s19 = smov [#allocation17]   ;;  %s1723_s21 = smov [#allocation2]  }
  0x49   :  { %s130_s20 = sshll.u32 %s1722_s19, 4  ;;  %s30_s23 = sshll.u32 %s1723_s21, 4  ;;  %s131_s20 = int_to_ptr.vmem [resolvable:$true] %s130_s20  ;;  %s1873_s23 = int_to_ptr.vmem [resolvable:$true] %s30_s23 }
  0x4a   :  { %s1502_s24 = scalar_lea.hbm %s2094_s9, 1024 }
  0x4b   :  { %p1503_p4 = scmp.ne.s32.totalorder %s2094_s9, %s1502_s24  ;;  %p1506_p5 = scmp.lt.u32.totalorder %s1502_s24, %s2094_s9 }
  0x4d   :  { %p1508_p6 = pnand %p1506_p5, %p1503_p4 }
  0x4f   :  { %1511 = shalt.err (!%p1508_p6)
}
  0x50   :  { %s1512_s7 = scalar_lea.vmem %s131_s20, 1024  ;;  %p1517_p8 = scmp.lt.s32.totalorder %s131_s20, %s131_s20 }
  0x51   :  { %p1513_p7 = scmp.ne.s32.totalorder %s131_s20, %s1512_s7  ;;  %p1518_p9 = scmp.lt.s32.totalorder %s1512_s7, %s1512_s7 }
  0x53   :  { %p1519_p10 = por %p1518_p9, %p1517_p8 }
  0x55   :  { %p1520_p11 = pnand %p1519_p10, %p1513_p7 }
  0x57   :  { %1523 = shalt.err (!%p1520_p11)
}
  0x58   :  { %136 = dma.hbm_to_vmem [thread:$0]  %s2094_s9, 1024, %s131_s20, [#allocation18], %s1718_s15, %s1718_s15, %s1719_s16  }
  0x59   :  { %s1524_s17 = scalar_lea.hbm %s2085_s0, 128 }
  0x5a   :  { %p1525_p12 = scmp.ne.s32.totalorder %s2085_s0, %s1524_s17  ;;  %p1528_p13 = scmp.lt.u32.totalorder %s1524_s17, %s2085_s0 }
  0x5c   :  { %p1530_p0 = pnand %p1528_p13, %p1525_p12 }
  0x5e   :  { %1533 = shalt.err (!%p1530_p0)
}
  0x5f   :  { %s1534_s21 = scalar_lea.vmem %s1873_s23, 128  ;;  %p1539_p2 = scmp.lt.s32.totalorder %s1873_s23, %s1873_s23 }
  0x60   :  { %p1535_p1 = scmp.ne.s32.totalorder %s1873_s23, %s1534_s21  ;;  %p1540_p3 = scmp.lt.s32.totalorder %s1534_s21, %s1534_s21 }
  0x62   :  { %p1541_p4 = por %p1540_p3, %p1539_p2 }
  0x64   :  { %p1542_p5 = pnand %p1541_p4, %p1535_p1 }
  0x66   :  { %1545 = shalt.err (!%p1542_p5)
}
  0x67   :  { %36 = dma.hbm_to_vmem [thread:$0]  %s2085_s0, 128, %s1873_s23, [#allocation3], %s1718_s15, %s1718_s15, %s1719_s16  }
  0x68   :  { %s1724_s25 = smov [#allocation7]   ;;  %s1725_s24 = smov [#allocation10]  }
  0x69   :  { %s55_s3 = sshll.u32 %s1724_s25, 4  ;;  %s77_s26 = sshll.u32 %s1725_s24, 4  ;;  %s56_s3 = int_to_ptr.vmem [resolvable:$true] %s55_s3  ;;  %s78_s26 = int_to_ptr.vmem [resolvable:$true] %s77_s26 }
  0x6a   :  { %s1546_s1 = scalar_lea.hbm %s2087_s2, 128 }
  0x6b   :  { %p1547_p6 = scmp.ne.s32.totalorder %s2087_s2, %s1546_s1  ;;  %p1550_p7 = scmp.lt.u32.totalorder %s1546_s1, %s2087_s2 }
  0x6d   :  { %p1552_p8 = pnand %p1550_p7, %p1547_p6 }
  0x6f   :  { %1555 = shalt.err (!%p1552_p8)
}
  0x70   :  { %s1556_s0 = scalar_lea.vmem %s56_s3, 128  ;;  %p1561_p10 = scmp.lt.s32.totalorder %s56_s3, %s56_s3 }
  0x71   :  { %p1557_p9 = scmp.ne.s32.totalorder %s56_s3, %s1556_s0  ;;  %p1562_p11 = scmp.lt.s32.totalorder %s1556_s0, %s1556_s0 }
  0x73   :  { %p1563_p12 = por %p1562_p11, %p1561_p10 }
  0x75   :  { %p1564_p13 = pnand %p1563_p12, %p1557_p9 }
  0x77   :  { %1567 = shalt.err (!%p1564_p13)
}
  0x78   :  { %58 = dma.hbm_to_vmem [thread:$0]  %s2087_s2, 128, %s56_s3, [#allocation6]  }
  0x79   :  { %s1568_s5 = scalar_lea.hbm %s2089_s4, 16 }
  0x7a   :  { %p1569_p0 = scmp.ne.s32.totalorder %s2089_s4, %s1568_s5  ;;  %p1572_p1 = scmp.lt.u32.totalorder %s1568_s5, %s2089_s4 }
  0x7c   :  { %p1574_p2 = pnand %p1572_p1, %p1569_p0 }
  0x7e   :  { %1577 = shalt.err (!%p1574_p2)
}
  0x7f   :  { %s1578_s20 = scalar_lea.vmem %s78_s26, 16  ;;  %s1582_s25 = scalar_lea.vmem %s78_s26, 32 }
  0x80   :  { %p1579_p3 = scmp.ne.s32.totalorder %s78_s26, %s1578_s20  ;;  %p1583_p4 = scmp.lt.s32.totalorder %s78_s26, %s78_s26 }
  0x81   :  { %p1584_p5 = scmp.lt.s32.totalorder %s1582_s25, %s1578_s20 }
  0x83   :  { %p1585_p6 = por %p1584_p5, %p1583_p4 }
  0x85   :  { %p1586_p7 = pnand %p1585_p6, %p1579_p3 }
  0x87   :  { %1589 = shalt.err (!%p1586_p7)
}
  0x88   :  { %80 = dma.hbm_to_vmem [thread:$0]  %s2089_s4, 16, %s78_s26, [#allocation9]  }
  0x89   :  { %s1726_s24 = smov [#allocation13]   ;;  %s1727_s28 = smov [#allocation16]  }
  0x8a   :  { %s99_s27 = sshll.u32 %s1726_s24, 4  ;;  %s121_s1 = sshll.u32 %s1727_s28, 4  ;;  %s100_s27 = int_to_ptr.vmem [resolvable:$true] %s99_s27  ;;  %s122_s1 = int_to_ptr.vmem [resolvable:$true] %s121_s1 }
  0x8b   :  { %s1590_s22 = scalar_lea.hbm %s2091_s6, 16 }
  0x8c   :  { %p1591_p8 = scmp.ne.s32.totalorder %s2091_s6, %s1590_s22  ;;  %p1594_p9 = scmp.lt.u32.totalorder %s1590_s22, %s2091_s6 }
  0x8e   :  { %p1596_p10 = pnand %p1594_p9, %p1591_p8 }
  0x90   :  { %1599 = shalt.err (!%p1596_p10)
}
  0x91   :  { %s1600_s4 = scalar_lea.vmem %s100_s27, 16  ;;  %s1604_s26 = scalar_lea.vmem %s100_s27, 32 }
  0x92   :  { %p1601_p11 = scmp.ne.s32.totalorder %s100_s27, %s1600_s4  ;;  %p1605_p12 = scmp.lt.s32.totalorder %s100_s27, %s100_s27 }
  0x93   :  { %p1606_p13 = scmp.lt.s32.totalorder %s1604_s26, %s1600_s4 }
  0x95   :  { %p1607_p0 = por %p1606_p13, %p1605_p12 }
  0x97   :  { %p1608_p1 = pnand %p1607_p0, %p1601_p11 }
  0x99   :  { %1611 = shalt.err (!%p1608_p1)
}
  0x9a   :  { %102 = dma.hbm_to_vmem [thread:$0]  %s2091_s6, 16, %s100_s27, [#allocation12]  }
  0x9b   :  { %s1612_s19 = scalar_lea.hbm %s2093_s8, 16 }
  0x9c   :  { %p1613_p2 = scmp.ne.s32.totalorder %s2093_s8, %s1612_s19  ;;  %p1616_p3 = scmp.lt.u32.totalorder %s1612_s19, %s2093_s8 }
  0x9e   :  { %p1618_p4 = pnand %p1616_p3, %p1613_p2 }
  0xa0   :  { %1621 = shalt.err (!%p1618_p4)
}
  0xa1   :  { %s1622_s2 = scalar_lea.vmem %s122_s1, 16  ;;  %s1626_s3 = scalar_lea.vmem %s122_s1, 32 }
  0xa2   :  { %p1623_p5 = scmp.ne.s32.totalorder %s122_s1, %s1622_s2  ;;  %p1627_p6 = scmp.lt.s32.totalorder %s122_s1, %s122_s1 }
  0xa3   :  { %p1628_p7 = scmp.lt.s32.totalorder %s1626_s3, %s1622_s2 }
  0xa5   :  { %p1629_p8 = por %p1628_p7, %p1627_p6 }
  0xa7   :  { %p1630_p9 = pnand %p1629_p8, %p1623_p5 }
  0xa9   :  { %1633 = shalt.err (!%p1630_p9)
}
  0xaa   :  { %124 = dma.hbm_to_vmem [thread:$0]  %s2093_s8, 16, %s122_s1, [#allocation15]  }
  0xab   :  { %s1728_s27 = smov [#allocation19]   ;;  %s1729_s7 = smov [#allocation20]  }
  0xac   :  { %s143_s28 = sshll.u32 %s1728_s27, 4  ;;  %s152_s14 = sshll.u32 %s1729_s7, 4  ;;  %s144_s28 = int_to_ptr.vmem [resolvable:$true] %s143_s28  ;;  %s1958_s14 = int_to_ptr.vmem [resolvable:$true] %s152_s14 }
  0xad   :  { %s1634_s0 = scalar_lea.hbm %s2095_s10, 16 }
  0xae   :  { %p1635_p10 = scmp.ne.s32.totalorder %s2095_s10, %s1634_s0  ;;  %p1638_p11 = scmp.lt.u32.totalorder %s1634_s0, %s2095_s10 }
  0xb0   :  { %p1640_p12 = pnand %p1638_p11, %p1635_p10 }
  0xb2   :  { %1643 = shalt.err (!%p1640_p12)
}
  0xb3   :  { %s1644_s8 = scalar_lea.vmem %s144_s28, 16  ;;  %s1648_s1 = scalar_lea.vmem %s144_s28, 32 }
  0xb4   :  { %p1645_p13 = scmp.ne.s32.totalorder %s144_s28, %s1644_s8  ;;  %p1649_p0 = scmp.lt.s32.totalorder %s144_s28, %s144_s28 }
  0xb5   :  { %p1650_p1 = scmp.lt.s32.totalorder %s1648_s1, %s1644_s8 }
  0xb7   :  { %p1651_p2 = por %p1650_p1, %p1649_p0 }
  0xb9   :  { %p1652_p3 = pnand %p1651_p2, %p1645_p13 }
  0xbb   :  { %1655 = shalt.err (!%p1652_p3)
}
  0xbc   :  { %146 = dma.hbm_to_vmem [thread:$0]  %s2095_s10, 16, %s144_s28, [#allocation18]  }
  0xbd   :  { %s1656_s19 = scalar_lea.hbm %s2096_s11, 1024 }
  0xbe   :  { %p1657_p4 = scmp.ne.s32.totalorder %s2096_s11, %s1656_s19  ;;  %p1660_p5 = scmp.lt.u32.totalorder %s1656_s19, %s2096_s11 }
  0xc0   :  { %p1662_p6 = pnand %p1660_p5, %p1657_p4 }
  0xc2   :  { %1665 = shalt.err (!%p1662_p6)
}
  0xc3   :  { %s1666_s2 = scalar_lea.vmem %s1958_s14, 1024  ;;  %p1671_p8 = scmp.lt.s32.totalorder %s1958_s14, %s1958_s14 }
  0xc4   :  { %p1667_p7 = scmp.ne.s32.totalorder %s1958_s14, %s1666_s2  ;;  %p1672_p9 = scmp.lt.s32.totalorder %s1666_s2, %s1666_s2 }
  0xc6   :  { %p1673_p10 = por %p1672_p9, %p1671_p8 }
  0xc8   :  { %p1674_p11 = pnand %p1673_p10, %p1667_p7 }
  0xca   :  { %1677 = shalt.err (!%p1674_p11)
}
  0xcb   :  { %158 = dma.hbm_to_vmem [thread:$0]  %s2096_s11, 1024, %s1958_s14, [#allocation21], %s1718_s15, %s1718_s15, %s1719_s16  }
  0xcc   :  { %1700 = dma.done.wait [#allocation3], 128  }
  0xcd   :  { %1701 = vsyncadd [#allocation3], 4294967168 }
  0xce   :  { %1702 = dma.done.wait [#allocation6], 256  }
  0xcf   :  { %1703 = vsyncadd [#allocation6], 4294967040 }
  0xd0   :  { %1704 = dma.done.wait [#allocation9], 1040  }
  0xd1   :  { %1705 = vsyncadd [#allocation9], 4294966256 }
  0xd2   :  { %1706 = dma.done.wait [#allocation12], 1040  }
  0xd3   :  { %1707 = vsyncadd [#allocation12], 4294966256 }
  0xd4   :  { %1708 = dma.done.wait [#allocation15], 2064  }
  0xd5   :  { %1709 = vsyncadd [#allocation15], 4294965232 }
  0xd6   :  { %1710 = dma.done.wait [#allocation18], 1040  }
  0xd7   :  { %1711 = vsyncadd [#allocation18], 4294966256 }
  0xd8   :  { %1712 = dma.done.wait [#allocation21], 1024  }
  0xd9   :  { %1713 = vsyncadd [#allocation21], 4294966272  ;;  %v1730_v0 = vmov 0.0   ;;  %vm1731_vm0 = vmmov 0   ;;  %v1364_v1 = vld [vmem:[#allocation8] sm:$0xff]   ;;  %v1365_v2 = vld [vmem:[#allocation8 + $0x8] sm:$0xff]   ;;  %v526_v41 = vlaneseq }
  0xda   :  { %1201 = vmatprep.subr.bf16.mxu0 %v1730_v0  ;;  %1217 = vmatprep.mubr.msk.bf16.mxu0 %vm1731_vm0, %v1730_v0  ;;  %v1366_v3 = vld [vmem:[#allocation8 + $0x10] sm:$0xff]   ;;  %v1367_v4 = vld [vmem:[#allocation8 + $0x18] sm:$0xff]   ;;  %v1368_v5 = vld [vmem:[#allocation8 + $0x20] sm:$0xff]   ;;  %vm324_vm1 = vcmask 130048   ;;  %v1732_v35 = vmov 0   ;;  %s1733_s11 = smov [#allocation22]  }
  0xdb   :  { %1221 = vmatprep.subr.bf16.mxu1 %v1730_v0  ;;  %1223 = vmatprep.mubr.msk.bf16.mxu1 %vm1731_vm0, %v1730_v0  ;;  %v1369_v6 = vld [vmem:[#allocation8 + $0x28] sm:$0xff]   ;;  %v1370_v7 = vld [vmem:[#allocation8 + $0x30] sm:$0xff]   ;;  %v1371_v8 = vld [vmem:[#allocation8 + $0x38] sm:$0xff]   ;;  %v527_v42 = vand.u32 127, %v526_v41  ;;  %s1065_s15 = sshll.u32 %s1733_s11, 4  ;;  %s1066_s15 = int_to_ptr.vmem [resolvable:$true] %s1065_s15 }
  0xdc   :  { %1202 = vmatpush3.bf16.msra.mxu0 %v1364_v1  ;;  %v2005_v9 = vld [vmem:[#allocation5] sm:$0xff]   ;;  %v1373_v15 = vld [vmem:[#allocation2] sm:$0xff]   ;;  %v1377_v19 = vld [vmem:[#allocation11 + $0x18] sm:$0xff]   ;;  %1363 = vset.pattern.permute.xlu0 %v1732_v35  ;;  %s1678_s16 = scalar_lea.vmem %s1066_s15, 128  ;;  %p1683_p13 = scmp.lt.s32.totalorder %s1066_s15, %s1066_s15 }
  0xdd   :  { %1203 = vmatprep.subr.bf16.mxu0 %v1730_v0  ;;  %v1374_v16 = vld [vmem:[#allocation11] sm:$0xff]   ;;  %v1375_v17 = vld [vmem:[#allocation11 + $0x8] sm:$0xff]   ;;  %v1376_v18 = vld [vmem:[#allocation11 + $0x10] sm:$0xff]   ;;  %p1679_p12 = scmp.ne.s32.totalorder %s1066_s15, %s1678_s16  ;;  %p1684_p0 = scmp.lt.s32.totalorder %s1678_s16, %s1678_s16 }
  0xde   :  { %v1378_v20 = vld [vmem:[#allocation11 + $0x20] sm:$0xff]   ;;  %v1379_v21 = vld [vmem:[#allocation11 + $0x28] sm:$0xff]   ;;  %v1380_v22 = vld [vmem:[#allocation11 + $0x30] sm:$0xff]  }
  0xdf   :  { %v1381_v23 = vld [vmem:[#allocation11 + $0x38] sm:$0xff]   ;;  %v1383_v46 = vld [vmem:[#allocation14] sm:$0xff]   ;;  %v1385_v47 = vld [vmem:[#allocation14 + $0x8] sm:$0xff]   ;;  %p1685_p1 = por %p1684_p0, %p1683_p13 }
  0xe0   :  { %1204 = vmatpush3.bf16.msra.mxu0 %v1365_v2  ;;  %v1089_v24 = vld [vmem:[#allocation10] ss:$0 sm:$0xff]  ;;  %v528_v34 = vld [vmem:[#allocation7] sm:$0xff]  ;;  %v1391_v50 = vld [vmem:[#allocation14 + $0x20] sm:$0xff]  }
  0xe1   :  { %1205 = vmatprep.subr.bf16.mxu0 %v1730_v0  ;;  %530 = vperm.xlu0 %1363, %v528_v34   ;;  %v1387_v48 = vld [vmem:[#allocation14 + $0x10] sm:$0xff]   ;;  %v1389_v49 = vld [vmem:[#allocation14 + $0x18] sm:$0xff]   ;;  %v1393_v51 = vld [vmem:[#allocation14 + $0x28] sm:$0xff]   ;;  %p1686_p2 = pnand %p1685_p1, %p1679_p12 }
  0xe2   :  { %v1395_v52 = vld [vmem:[#allocation14 + $0x30] sm:$0xff]   ;;  %v1100_v53 = vld [vmem:[#allocation13] ss:$0 sm:$0xff]  ;;  %v1382_v61 = vld [vmem:[#allocation14 + $0x40] sm:$0xff]  }
  0xe3   :  { %v1384_v62 = vld [vmem:[#allocation14 + $0x48] sm:$0xff]   ;;  %v1386_v63 = vld [vmem:[#allocation14 + $0x50] sm:$0xff]   ;;  %v1388_v1 = vld [vmem:[#allocation14 + $0x58] sm:$0xff]  }
  0xe4   :  { %1206 = vmatpush3.bf16.msra.mxu0 %v1366_v3  ;;  %v1390_v2 = vld [vmem:[#allocation14 + $0x60] sm:$0xff]   ;;  %v1392_v3 = vld [vmem:[#allocation14 + $0x68] sm:$0xff]  }
  0xe5   :  { %1207 = vmatprep.subr.bf16.mxu0 %v1730_v0  ;;  %v1410_v34 = vld [vmem:[#allocation20 + $0x20] sm:$0xff]   ;;  %v1411_v35 = vld [vmem:[#allocation20 + $0x28] sm:$0xff]  }
  0xe8   :  { %1208 = vmatpush3.bf16.msra.mxu0 %v1367_v4  ;;  %v1394_v4 = vld [vmem:[#allocation14 + $0x70] sm:$0xff]  }
  0xe9   :  { %1209 = vmatprep.subr.bf16.mxu0 %v1730_v0 }
  0xec   :  { %1210 = vmatpush3.bf16.msra.mxu0 %v1368_v5  ;;  %v1396_v5 = vld [vmem:[#allocation14 + $0x78] sm:$0xff]  }
  0xed   :  { %1211 = vmatprep.subr.bf16.mxu0 %v1730_v0 }
  0xf0   :  { %1212 = vmatpush3.bf16.msra.mxu0 %v1369_v6 }
  0xf1   :  { %1213 = vmatprep.subr.bf16.mxu0 %v1730_v0 }
  0xf4   :  { %1214 = vmatpush3.bf16.msra.mxu0 %v1370_v7 }
  0xf5   :  { %1215 = vmatprep.subr.bf16.mxu0 %v1730_v0 }
  0xf8   :  { %1216 = vmatpush3.bf16.msra.mxu0 %v1371_v8 }
  0xf9   :  { %1247 = vmatprep.subr.bf16.mxu0 %v1730_v0 }
  0xfb   :  { %1218 = vmatmul.mubr.bf16.vlgmr.msra.gmra.mrb[0].mxu0 %v2005_v9 }
  0xfc   :  { %1249 = vmatprep.mubr.msk.bf16.mxu0 %vm1731_vm0, %v1730_v0 }
 0x160   :  { %v531_v43 = vpop.permute.xlu0 %530 }
 0x161   :  { %vm532_vm2 = vcmp.eq.s32.totalorder %v527_v42, %v531_v43 }
 0x162   :  { %v1102_v44 = vsel %vm532_vm2, 1.0, %v1730_v0 }
 0x163   :  { %v535_v45 = vpack.c.bf16 %v1102_v44, %v1102_v44 }
 0x1ce   :  { %v304_v10 = vpop.f32.mrb[0].mxu0 }
 0x1cf   :  { %v1219_v11 = vpop.f32.mrb[1].mxu0 }
 0x1d0   :  { %v307_v12 = vpop.f32.mrb[2].mxu0 }
 0x1d1   :  { %v311_v13 = vpack.c.bf16 %v307_v12, %v304_v10  ;;  %v1220_v14 = vpop.f32.mrb[3].mxu0  ;;  %v1397_v10 = vld [vmem:[#allocation14 + $0x38] sm:$0xff]   ;;  %v1398_v12 = vld [vmem:[#allocation17] sm:$0xff]  }
 0x1d2   :  { %v1400_v14 = vld [vmem:[#allocation17 + $0x10] sm:$0xff]  }
 0x1d3   :  { %1222 = vmatpush3.bf16.msra.mxu1 %v311_v13  ;;  %v1399_v13 = vld [vmem:[#allocation17 + $0x8] sm:$0xff]  }
 0x1d4   :  { %1227 = vmatprep.subr.bf16.mxu1 %v1730_v0 }
 0x1d6   :  { %1224 = vmatmul.mubr.msk.bf16.vlgmr.msra.gmra.mrb[0].mxu1 %vm324_vm1, %v1373_v15 }
 0x1d7   :  { %1228 = vmatpush3.bf16.msra.mxu1 %v1374_v16  ;;  %1243 = vmatprep.mubr.msk.bf16.mxu1 %vm1731_vm0, %v1730_v0  ;;  %v1402_v16 = vld [vmem:[#allocation17 + $0x20] sm:$0xff]  }
 0x1d8   :  { %1229 = vmatprep.subr.bf16.mxu1 %v1730_v0 }
 0x1db   :  { %1230 = vmatpush3.bf16.msra.mxu1 %v1375_v17  ;;  %v1403_v17 = vld [vmem:[#allocation17 + $0x28] sm:$0xff]  }
 0x1dc   :  { %1231 = vmatprep.subr.bf16.mxu1 %v1730_v0 }
 0x1df   :  { %1232 = vmatpush3.bf16.msra.mxu1 %v1376_v18 }
 0x1e0   :  { %1233 = vmatprep.subr.bf16.mxu1 %v1730_v0 }
 0x1e3   :  { %1234 = vmatpush3.bf16.msra.mxu1 %v1377_v19 }
 0x1e4   :  { %1235 = vmatprep.subr.bf16.mxu1 %v1730_v0 }
 0x1e7   :  { %1236 = vmatpush3.bf16.msra.mxu1 %v1378_v20 }
 0x1e8   :  { %1237 = vmatprep.subr.bf16.mxu1 %v1730_v0 }
 0x1eb   :  { %1238 = vmatpush3.bf16.msra.mxu1 %v1379_v21 }
 0x1ec   :  { %1239 = vmatprep.subr.bf16.mxu1 %v1730_v0 }
 0x1ef   :  { %1240 = vmatpush3.bf16.msra.mxu1 %v1380_v22 }
 0x1f0   :  { %1241 = vmatprep.subr.bf16.mxu1 %v1730_v0 }
 0x1f3   :  { %1242 = vmatpush3.bf16.msra.mxu1 %v1381_v23 }
 0x1f4   :  { %1253 = vmatprep.subr.bf16.mxu1 %v1730_v0 }
 0x2a9   :  { %v362_v25 = vpop.f32.mrb[0].mxu1 }
 0x2aa   :  { %v363_v26 = vadd.f32 %v1089_v24, %v362_v25  ;;  %v1225_v27 = vpop.f32.mrb[1].mxu1 }
 0x2ab   :  { %v365_v28 = vpop.f32.mrb[2].mxu1 }
 0x2ac   :  { %v366_v29 = vadd.f32 %v1089_v24, %v365_v28  ;;  %v1226_v30 = vpop.f32.mrb[3].mxu1  ;;  %v369_v31 = vmax.f32 %v363_v26, 0.0  ;;  %v1404_v28 = vld [vmem:[#allocation17 + $0x30] sm:$0xff]  }
 0x2ad   :  { %v1406_v30 = vld [vmem:[#allocation20] sm:$0xff]  }
 0x2ae   :  { %v370_v32 = vmax.f32 %v366_v29, 0.0  ;;  %v1405_v29 = vld [vmem:[#allocation17 + $0x38] sm:$0xff]  }
 0x2b0   :  { %v371_v33 = vpack.c.bf16 %v370_v32, %v369_v31  ;;  %v1407_v31 = vld [vmem:[#allocation20 + $0x8] sm:$0xff]   ;;  %v1408_v32 = vld [vmem:[#allocation20 + $0x10] sm:$0xff]  }
 0x2b2   :  { %1244 = vmatmul.mubr.bf16.vlgmr.msra.gmra.mrb[4].mxu1 %v371_v33  ;;  %v1409_v33 = vld [vmem:[#allocation20 + $0x18] sm:$0xff]  }
 0x2b3   :  { %1255 = vmatprep.mubr.msk.bf16.mxu1 %vm1731_vm0, %v1730_v0 }
 0x385   :  { %v470_v36 = vpop.f32.mrb[4].mxu1 }
 0x386   :  { %v1245_v37 = vpop.f32.mrb[5].mxu1 }
 0x387   :  { %v473_v38 = vpop.f32.mrb[6].mxu1  ;;  %v1121_v37 = vld [vmem:[#allocation16] ss:$0 sm:$0xff] }
 0x388   :  { %v477_v39 = vpack.c.bf16 %v473_v38, %v470_v36  ;;  %v1246_v40 = vpop.f32.mrb[7].mxu1 }
 0x38a   :  { %1248 = vmatpush3.bf16.msra.mxu0 %v477_v39 }
 0x38b   :  { %1259 = vmatprep.subr.bf16.mxu0 %v1730_v0 }
 0x38d   :  { %1250 = vmatmul.mubr.msk.bf16.vlgmr.msra.gmra.mrb[4].mxu0 %vm324_vm1, %v1373_v15  ;;  %v1401_v15 = vld [vmem:[#allocation17 + $0x18] sm:$0xff]  }
 0x38e   :  { %1260 = vmatpush3.bf16.msra.mxu0 %v2005_v9  ;;  %1261 = vmatprep.mubr.msk.bf16.mxu0 %vm1731_vm0, %v1730_v0 }
 0x38f   :  { %1285 = vmatprep.subr.bf16.mxu0 %v1730_v0 }
 0x395   :  { %1262 = vmatmul.mubr.msk.bf16.vlgmr.msra.gmra.mrb[8].mxu0 %vm324_vm1, %v535_v45 }
 0x396   :  { %1301 = vmatprep.mubr.msk.bf16.mxu0 %vm1731_vm0, %v1730_v0  ;;  %1286 = vmatpush3.bf16.msra.mxu0 %v1383_v46  ;;  %v1413_v46 = vld [vmem:[#allocation20 + $0x38] sm:$0xff]  }
 0x397   :  { %1287 = vmatprep.subr.bf16.mxu0 %v1730_v0 }
 0x39a   :  { %1288 = vmatpush3.bf16.msra.mxu0 %v1385_v47  ;;  %v1122_v47 = vld [vmem:[#allocation19] ss:$0 sm:$0xff] }
 0x39b   :  { %1289 = vmatprep.subr.bf16.mxu0 %v1730_v0 }
 0x39e   :  { %1290 = vmatpush3.bf16.msra.mxu0 %v1387_v48 }
 0x39f   :  { %1291 = vmatprep.subr.bf16.mxu0 %v1730_v0 }
 0x3a2   :  { %1292 = vmatpush3.bf16.msra.mxu0 %v1389_v49 }
 0x3a3   :  { %1293 = vmatprep.subr.bf16.mxu0 %v1730_v0 }
 0x3a6   :  { %1294 = vmatpush3.bf16.msra.mxu0 %v1391_v50 }
 0x3a7   :  { %1295 = vmatprep.subr.bf16.mxu0 %v1730_v0 }
 0x3aa   :  { %1296 = vmatpush3.bf16.msra.mxu0 %v1393_v51 }
 0x3ab   :  { %1297 = vmatprep.subr.bf16.mxu0 %v1730_v0 }
 0x3ae   :  { %1298 = vmatpush3.bf16.msra.mxu0 %v1395_v52 }
 0x3af   :  { %1299 = vmatprep.subr.bf16.mxu0 %v1730_v0 }
 0x3b2   :  { %1300 = vmatpush3.bf16.msra.mxu0 %v1397_v10 }
 0x3b3   :  { %1325 = vmatprep.subr.bf16.mxu0 %v1730_v0 }
 0x460   :  { %v519_v54 = vpop.f32.mrb[4].mxu0 }
 0x461   :  { %v1251_v55 = vpop.f32.mrb[5].mxu0  ;;  %v520_v57 = vadd.f32 %v1100_v53, %v519_v54 }
 0x462   :  { %v522_v56 = vpop.f32.mrb[6].mxu0 }
 0x463   :  { %v523_v58 = vadd.f32 %v1100_v53, %v522_v56  ;;  %v1252_v59 = vpop.f32.mrb[7].mxu0 }
 0x465   :  { %v536_v60 = vpack.c.bf16 %v523_v58, %v520_v57 }
 0x467   :  { %1254 = vmatpush3.bf16.msra.mxu1 %v536_v60 }
 0x468   :  { %1265 = vmatprep.subr.bf16.mxu1 %v1730_v0  ;;  %v615_v6 = vpop.f32.mrb[8].mxu0 }
 0x469   :  { %v638_v7 = vpack.c.bf16 %v615_v6, %v615_v6  ;;  %v1263_v8 = vpop.f32.mrb[9].mxu0 }
 0x46a   :  { %1256 = vmatmul.mubr.msk.bf16.vlgmr.msra.gmra.mrb[8].mxu1 %vm324_vm1, %v535_v45  ;;  %v618_v9 = vpop.f32.mrb[10].mxu0  ;;  %v1412_v45 = vld [vmem:[#allocation20 + $0x30] sm:$0xff]  }
 0x46b   :  { %1266 = vmatpush3.bf16.msra.mxu1 %v1382_v61  ;;  %1281 = vmatprep.mubr.msk.bf16.mxu1 %vm1731_vm0, %v1730_v0  ;;  %v1264_v11 = vpop.f32.mrb[11].mxu0 }
 0x46c   :  { %1267 = vmatprep.subr.bf16.mxu1 %v1730_v0 }
 0x46f   :  { %1268 = vmatpush3.bf16.msra.mxu1 %v1384_v62 }
 0x470   :  { %1269 = vmatprep.subr.bf16.mxu1 %v1730_v0 }
 0x473   :  { %1270 = vmatpush3.bf16.msra.mxu1 %v1386_v63 }
 0x474   :  { %1271 = vmatprep.subr.bf16.mxu1 %v1730_v0 }
 0x477   :  { %1272 = vmatpush3.bf16.msra.mxu1 %v1388_v1 }
 0x478   :  { %1273 = vmatprep.subr.bf16.mxu1 %v1730_v0 }
 0x47b   :  { %1274 = vmatpush3.bf16.msra.mxu1 %v1390_v2 }
 0x47c   :  { %1275 = vmatprep.subr.bf16.mxu1 %v1730_v0 }
 0x47f   :  { %1276 = vmatpush3.bf16.msra.mxu1 %v1392_v3 }
 0x480   :  { %1277 = vmatprep.subr.bf16.mxu1 %v1730_v0 }
 0x483   :  { %1278 = vmatpush3.bf16.msra.mxu1 %v1394_v4 }
 0x484   :  { %1279 = vmatprep.subr.bf16.mxu1 %v1730_v0 }
 0x487   :  { %1280 = vmatpush3.bf16.msra.mxu1 %v1396_v5 }
 0x488   :  { %1305 = vmatprep.subr.bf16.mxu1 %v1730_v0 }
 0x48a   :  { %1282 = vmatmul.mubr.bf16.vlgmr.msra.gmra.mrb[12].mxu1 %v638_v7 }
 0x48b   :  { %1321 = vmatprep.mubr.msk.bf16.mxu1 %vm1731_vm0, %v1730_v0  ;;  %1306 = vmatpush3.bf16.msra.mxu1 %v1398_v12 }
 0x48c   :  { %1307 = vmatprep.subr.bf16.mxu1 %v1730_v0 }
 0x48f   :  { %1308 = vmatpush3.bf16.msra.mxu1 %v1399_v13 }
 0x490   :  { %1309 = vmatprep.subr.bf16.mxu1 %v1730_v0 }
 0x493   :  { %1310 = vmatpush3.bf16.msra.mxu1 %v1400_v14 }
 0x494   :  { %1311 = vmatprep.subr.bf16.mxu1 %v1730_v0 }
 0x497   :  { %1312 = vmatpush3.bf16.msra.mxu1 %v1401_v15 }
 0x498   :  { %1313 = vmatprep.subr.bf16.mxu1 %v1730_v0 }
 0x49b   :  { %1314 = vmatpush3.bf16.msra.mxu1 %v1402_v16 }
 0x49c   :  { %1315 = vmatprep.subr.bf16.mxu1 %v1730_v0 }
 0x49f   :  { %1316 = vmatpush3.bf16.msra.mxu1 %v1403_v17 }
 0x4a0   :  { %1317 = vmatprep.subr.bf16.mxu1 %v1730_v0 }
 0x4a3   :  { %1318 = vmatpush3.bf16.msra.mxu1 %v1404_v28 }
 0x4a4   :  { %1319 = vmatprep.subr.bf16.mxu1 %v1730_v0 }
 0x4a7   :  { %1320 = vmatpush3.bf16.msra.mxu1 %v1405_v29 }
 0x53d   :  { %v574_v18 = vpop.f32.mrb[8].mxu1 }
 0x53e   :  { %v580_v19 = vmax.f32 %v574_v18, 0.0  ;;  %v1257_v20 = vpop.f32.mrb[9].mxu1 }
 0x53f   :  { %v577_v21 = vpop.f32.mrb[10].mxu1 }
 0x540   :  { %v621_v22 = vpack.c.bf16 %v580_v19, %v580_v19  ;;  %v1258_v23 = vpop.f32.mrb[11].mxu1 }
 0x542   :  { %1302 = vmatmul.mubr.bf16.vlgmr.msra.gmra.mrb[12].mxu0 %v621_v22 }
 0x543   :  { %1341 = vmatprep.mubr.msk.bf16.mxu0 %vm1731_vm0, %v1730_v0  ;;  %1326 = vmatpush3.bf16.msra.mxu0 %v1406_v30 }
 0x544   :  { %1327 = vmatprep.subr.bf16.mxu0 %v1730_v0 }
 0x547   :  { %1328 = vmatpush3.bf16.msra.mxu0 %v1407_v31 }
 0x548   :  { %1329 = vmatprep.subr.bf16.mxu0 %v1730_v0 }
 0x54b   :  { %1330 = vmatpush3.bf16.msra.mxu0 %v1408_v32 }
 0x54c   :  { %1331 = vmatprep.subr.bf16.mxu0 %v1730_v0 }
 0x54f   :  { %1332 = vmatpush3.bf16.msra.mxu0 %v1409_v33 }
 0x550   :  { %1333 = vmatprep.subr.bf16.mxu0 %v1730_v0 }
 0x553   :  { %1334 = vmatpush3.bf16.msra.mxu0 %v1410_v34 }
 0x554   :  { %1335 = vmatprep.subr.bf16.mxu0 %v1730_v0 }
 0x557   :  { %1336 = vmatpush3.bf16.msra.mxu0 %v1411_v35 }
 0x558   :  { %1337 = vmatprep.subr.bf16.mxu0 %v1730_v0 }
 0x55b   :  { %1338 = vmatpush3.bf16.msra.mxu0 %v1412_v45 }
 0x55c   :  { %1339 = vmatprep.subr.bf16.mxu0 %v1730_v0 }
 0x55d   :  { %v737_v24 = vpop.f32.mrb[12].mxu1 }
 0x55e   :  { %v1283_v25 = vpop.f32.mrb[13].mxu1 }
 0x55f   :  { %v740_v26 = vpop.f32.mrb[14].mxu1  ;;  %1340 = vmatpush3.bf16.msra.mxu0 %v1413_v46 }
 0x560   :  { %v1284_v27 = vpop.f32.mrb[15].mxu1 }
 0x615   :  { %v825_v36 = vpop.f32.mrb[12].mxu0 }
 0x616   :  { %v826_v38 = vadd.f32 %v825_v36, %v737_v24  ;;  %v1303_v39 = vpop.f32.mrb[13].mxu0 }
 0x617   :  { %v828_v40 = vpop.f32.mrb[14].mxu0 }
 0x618   :  { %v838_v41 = vadd.f32 %v1121_v37, %v826_v38  ;;  %v1304_v42 = vpop.f32.mrb[15].mxu0 }
 0x61a   :  { %v839_v43 = vmax.f32 %v838_v41, 0.0 }
 0x61c   :  { %v840_v44 = vpack.c.bf16 %v839_v43, %v839_v43 }
 0x61e   :  { %1322 = vmatmul.mubr.bf16.vlgmr.msra.gmra.mrb[16].mxu1 %v840_v44 }
 0x6f1   :  { %v946_v48 = vpop.f32.mrb[16].mxu1 }
 0x6f2   :  { %v947_v49 = vadd.f32 %v1122_v47, %v946_v48  ;;  %v1323_v50 = vpop.f32.mrb[17].mxu1 }
 0x6f3   :  { %v949_v51 = vpop.f32.mrb[18].mxu1 }
 0x6f4   :  { %v952_v52 = vmax.f32 %v947_v49, 0.0  ;;  %v1324_v53 = vpop.f32.mrb[19].mxu1 }
 0x6f6   :  { %v953_v54 = vpack.c.bf16 %v952_v52, %v952_v52 }
 0x6f8   :  { %1342 = vmatmul.mubr.bf16.vlgmr.msra.gmra.mrb[16].mxu0 %v953_v54 }
 0x7cb   :  { %v1052_v55 = vpop.f32.mrb[16].mxu0 }
 0x7cc   :  { %1058 = vst [vmem:[#allocation22] sm:$0xff] %v1052_v55  ;;  %v1343_v56 = vpop.f32.mrb[17].mxu0 }
 0x7cd   :  { %v1055_v57 = vpop.f32.mrb[18].mxu0 }
 0x7ce   :  { %1689 = shalt.err (!%p1686_p2)
}
 0x7cf   :  { %s1690_s27 = scalar_lea.hbm %s2097_s12, 128 }
 0x7d0   :  { %p1691_p3 = scmp.ne.s32.totalorder %s2097_s12, %s1690_s27  ;;  %p1694_p4 = scmp.lt.u32.totalorder %s1690_s27, %s2097_s12 }
 0x7d2   :  { %p1696_p5 = pnand %p1694_p4, %p1691_p3 }
 0x7d4   :  { %1699 = shalt.err (!%p1696_p5)
}
 0x7d5   :  { %1068 = dma.vmem_to_hbm [thread:$0]  %s1066_s15, 128, %s2097_s12, [#allocation4]   ;;  %v1344_v0 = vpop.f32.mrb[19].mxu0 }
 0x7d6   :  { %1714 = dma.done.wait [#allocation4], 128  }
 0x7d7   :  { %1715 = vsyncadd [#allocation4], 4294967168 }
 0x7d8   :  { %1072 = vsyncpa [#allocation3], 1 }
 0x7d9   :  { %1073 = vsyncpa [#allocation6], 1 }
 0x7da   :  { %1074 = vsyncpa [#allocation9], 1 }
 0x7db   :  { %1075 = vsyncpa [#allocation12], 1 }
 0x7dc   :  { %1076 = vsyncpa [#allocation15], 1 }
 0x7dd   :  { %1077 = vsyncpa [#allocation18], 1 }
 0x7de   :  { %1078 = vsyncpa [#allocation21], 1 }
 0x7df   :  { %1079 = vsyncpa [#allocation4], 1 }

</bundles_post_ra>
